<compile_context>
chip_gen: v7x
topology: tpu7x:2x2x1
jax: 0.10.0
libtpu: 0.0.40
codegen_flags: <defaults>
</compile_context>

<pallas_src>
import jax
import jax.numpy as jnp
from jax import lax
from jax.experimental import pallas as pl
from jax.experimental.pallas import tpu as pltpu

LANES = 128
SUBLANES = 8


def _round_up(x, m):
    return (x + m - 1) // m * m


def _round_down_to(x, m):
    return max(m, (x // m) * m)


def _vmem_capacity_bytes():
    """Physical VMEM per TensorCore; conservative (v7x-like) fallback if query fails."""
    try:
        info = pltpu.get_tpu_info()
        cap = getattr(info, "vmem_capacity_bytes", None)
        if cap:
            return int(cap)
    except Exception:
        pass
    return 64 << 20


def _gather_colors_kernel(blk_start_ref, blk_count_ref, fidx_ref, avgT_ref, out_ref):
    # grid = (pixel tiles [parallel], per-tile face blocks [arbitrary, accumulated]).
    i = pl.program_id(0)
    j = pl.program_id(1)
    _, f_blk = avgT_ref.shape            # (C_pad, f_blk)
    tile_w = out_ref.shape[1]            # (C_pad, tile_w)

    @pl.when(j == 0)
    def _():
        out_ref[...] = jnp.zeros_like(out_ref)

    # Only face blocks this pixel tile actually references are visited; tiles with
    # fewer blocks than the static max skip the remaining steps entirely.
    @pl.when(j < blk_count_ref[i])
    def _():
        blk = blk_start_ref[i] + j
        pix = fidx_ref[0]                                   # (1, tile_w) int32
        # Shift the small (1, tile_w) pixel-id row instead of the big iota.
        pix_local = pix - blk * f_blk                       # (1, tile_w)
        local_iota = lax.broadcasted_iota(jnp.int32, (f_blk, tile_w), 0)
        # Background (-1) / out-of-block ids match nothing -> zero column (exact).
        onehot = (local_iota == pix_local).astype(jnp.float32)   # (f_blk, tile_w)
        # Single MXU matmul + lane-dense accumulate into the resident output block.
        out_ref[...] += jnp.dot(avgT_ref[...], onehot,
                                preferred_element_type=jnp.float32)


def flat_color_shader(pix_to_face, faces, verts_colors, *, tile_w=None, f_blk=None,
                      max_blocks=None, channels_last=True):
    """pix_to_face: (N,H,W,K) int, faces: (F,3) int, verts_colors: (V,C) float.

    Returns (N, H, W, C) float32 flat-shaded pixel colors (faces_per_pixel slot 0),
    or (C, N, H, W) when channels_last=False (avoids the wrapper transpose pass).
    """
    N, H, W, _K = pix_to_face.shape
    F = faces.shape[0]
    _V, C = verts_colors.shape
    P = N * H * W
    C_pad = _round_up(max(C, 1), SUBLANES)

    # ---- hoisted precompute: flat per-face mean colors (plain XLA gather) ----
    avg = verts_colors.astype(jnp.float32)[faces].mean(axis=1)          # (F, C)

    # ---- per-generation tile sizing ----
    vmem_cap = _vmem_capacity_bytes()
    small_vmem = vmem_cap < (100 << 20)          # v7x: 64 MiB/TC; v5e/v6e: 128 MiB
    onehot_budget = (6 << 20) if small_vmem else (16 << 20)
    vmem_cap_limit = min((40 << 20) if small_vmem else (96 << 20), vmem_cap * 3 // 4)

    if f_blk is None:
        f_blk = min(512, _round_up(F, LANES))
    f_blk = max(LANES, _round_up(int(f_blk), LANES))

    if tile_w is None:
        tile_w = _round_down_to(onehot_budget // (f_blk * 4), LANES)
        tile_w = min(tile_w, 16384, _round_up(P, LANES))
        # Keep >= 2 pixel tiles so the "parallel" axis spans both v7x TensorCores.
        half_p = _round_down_to(_round_up(P, LANES) // 2, LANES)
        tile_w = min(tile_w, half_p)
    tile_w = max(LANES, _round_up(int(tile_w), LANES))

    def vmem_est(fb, tw):
        transients = 3 * fb * tw                       # one-hot + iota/compare transients
        blocks = 2 * (tw + C_pad * fb + C_pad * tw)    # double-buffered in/out blocks
        return 4 * (transients + blocks + C_pad * tw)

    # Clamp (user-supplied) tile sizes against this generation's VMEM (no alloc fail).
    while vmem_est(f_blk, tile_w) + (4 << 20) > vmem_cap_limit and tile_w > LANES:
        tile_w = _round_down_to(tile_w // 2, LANES)
    while vmem_est(f_blk, tile_w) + (4 << 20) > vmem_cap_limit and f_blk > LANES:
        f_blk = _round_down_to(f_blk // 2, LANES)

    F_pad = _round_up(F, f_blk)
    num_fblk = F_pad // f_blk
    P_pad = _round_up(P, tile_w)
    num_tiles = P_pad // tile_w

    # ---- glue (plain JAX): flatten / sanitize / pad pixel face ids ----
    face_idx = pix_to_face[..., 0].astype(jnp.int32).reshape(P)
    # Map out-of-range ids (>= F) to background instead of silently reading zeros.
    face_idx = jnp.where((face_idx >= 0) & (face_idx < F), face_idx, -1)
    fidx = jnp.pad(face_idx, (0, P_pad - P), constant_values=-1)
    tiles = fidx.reshape(num_tiles, tile_w)

    # Per-tile face-block [min, max] range for the scalar-prefetch schedule.
    valid = tiles >= 0
    blk_of = jnp.where(valid, tiles // f_blk, 0)
    lo = jnp.min(jnp.where(valid, blk_of, num_fblk - 1), axis=1)
    hi = jnp.max(blk_of, axis=1)
    any_valid = jnp.any(valid, axis=1)
    blk_start = jnp.where(any_valid, lo, 0).astype(jnp.int32)
    blk_count = jnp.where(any_valid, hi - lo + 1, 0).astype(jnp.int32)

    if max_blocks is None:
        try:
            max_blocks = int(jnp.max(blk_count))   # static grid extent (concrete inputs)
        except (jax.errors.ConcretizationTypeError, TypeError):
            max_blocks = num_fblk                  # under jit: worst case, skipped per tile
    max_blocks = int(min(max(int(max_blocks), 1), num_fblk))

    fidx3d = tiles.reshape(num_tiles, 1, tile_w)

    # (C_pad, F_pad); padded channel rows / face columns are zero.
    avgT = jnp.zeros((C_pad, F_pad), jnp.float32).at[:C, :F].set(avg.T)

    cost = pl.CostEstimate(
        flops=2 * C_pad * f_blk * tile_w * num_tiles * max_blocks,
        transcendentals=0,
        bytes_accessed=(P_pad * 4                                     # pixel ids
                        + num_tiles * max_blocks * C_pad * f_blk * 4  # avgT per (i, j)
                        + C_pad * P_pad * 4),                         # output
    )
    vmem_limit = int(min(max(vmem_est(f_blk, tile_w) + (4 << 20), 16 << 20),
                         vmem_cap_limit))

    nfb = num_fblk  # closure for the index_map clamp

    out = pl.pallas_call(
        _gather_colors_kernel,
        out_shape=jax.ShapeDtypeStruct((C_pad, P_pad), jnp.float32),
        grid_spec=pltpu.PrefetchScalarGridSpec(
            num_scalar_prefetch=2,
            grid=(num_tiles, max_blocks),
            in_specs=[
                # pixel face ids for tile i (constant across j -> fetched once per i)
                pl.BlockSpec((1, 1, tile_w), lambda i, j, bs, bc: (i, 0, 0)),
                # avg colors^T block at the tile's own block range (clamped for skipped j)
                pl.BlockSpec((C_pad, f_blk),
                             lambda i, j, bs, bc: (0, jnp.minimum(bs[i] + j, nfb - 1))),
            ],
            out_specs=pl.BlockSpec((C_pad, tile_w), lambda i, j, bs, bc: (0, i)),
        ),
        compiler_params=pltpu.CompilerParams(
            dimension_semantics=("parallel", "arbitrary"),
            vmem_limit_bytes=vmem_limit,
        ),
        cost_estimate=cost,
    )(blk_start, blk_count, fidx3d, avgT)

    colors = out[:C, :P]                          # (C, P)
    if not channels_last:
        return colors.reshape(C, N, H, W)         # channel-first: no transpose HBM pass
    return colors.T.reshape(N, H, W, C)


if __name__ == "__main__":
    key = jax.random.PRNGKey(0)
    k1, k2, k3, k4 = jax.random.split(key, 4)

    # Small synthetic "mesh" + "fragments" consistent with the render pass.
    N, H, W, K = 2, 32, 32, 2
    V, F = 64, 300
    verts_colors = jax.random.uniform(k1, (V, 3), jnp.float32)           # verts_features_packed
    faces = jax.random.randint(k2, (F, 3), 0, V, dtype=jnp.int32)        # faces_packed
    P = N * H * W

    # Case A: random pix_to_face (every tile touches every face block).
    p2f_rand = jax.random.randint(k3, (N, H, W, K), -1, F, dtype=jnp.int32)

    # Case B: spatially coherent pix_to_face (exercises per-tile block skipping).
    lin = jnp.arange(P, dtype=jnp.int32).reshape(N, H, W)
    coh = (lin * F) // P + jax.random.randint(k4, (N, H, W), -2, 3, dtype=jnp.int32)
    coh = jnp.clip(coh, -1, F - 1)
    p2f_coh = jnp.stack([coh, coh], axis=-1)

    avg_ref = verts_colors[faces].mean(axis=1)                           # (F, 3)

    def reference(p2f):
        fi = p2f[..., 0]
        return jnp.where((fi >= 0)[..., None], avg_ref[jnp.clip(fi, 0, F - 1)], 0.0)

    cases = [
        # small explicit tiles purely to exercise multi-block accumulation + skipping
        ("random/explicit", p2f_rand, dict(tile_w=512, f_blk=128)),
        ("coherent/explicit", p2f_coh, dict(tile_w=512, f_blk=128)),
        ("coherent/auto", p2f_coh, {}),
    ]
    for name, p2f, kw in cases:
        out = jax.block_until_ready(flat_color_shader(p2f, faces, verts_colors, **kw))
        ref = reference(p2f)
        assert out.shape == (N, H, W, 3) and out.dtype == jnp.float32, name
        assert jnp.allclose(out, ref, atol=1e-5), f"mismatch vs reference ({name})"

    print("KERNEL_OK")
</pallas_src>

<mosaic_0001>
module attributes {stable_mosaic.version = 11 : i64} {
  func.func @_gather_colors_kernel(%arg0: i32, %arg1: i32, %arg2: memref<4xi32, #tpu.memory_space<smem>>, %arg3: memref<4xi32, #tpu.memory_space<smem>>, %arg4: memref<1x1x512xi32, #tpu.memory_space<vmem>>, %arg5: memref<8x128xf32, #tpu.memory_space<vmem>>, %arg6: memref<8x512xf32, #tpu.memory_space<vmem>>) attributes {dimension_semantics = [#tpu.dimension_semantics<parallel>, #tpu.dimension_semantics<arbitrary>], iteration_bounds = array<i64: 4, 3>, scalar_prefetch = 2 : i64, scratch_operands = 0 : i64, tpu.core_type = #tpu.core_type<tc>, window_params = [{transform_indices = @transform_0, window_bounds = array<i64: 1, 1, 512>}, {transform_indices = @transform_1, window_bounds = array<i64: 8, 128>}, {transform_indices = @transform_2, window_bounds = array<i64: 8, 512>}]} {
    %c0_i32 = arith.constant 0 : i32
    %0 = arith.cmpi eq, %arg1, %c0_i32 : i32
    %1 = arith.extui %0 : i1 to i32
    %c0_i32_0 = arith.constant 0 : i32
    %2 = arith.cmpi ne, %1, %c0_i32_0 : i32
    scf.if %2 {
      %cst = arith.constant 0.000000e+00 : f32
      %8 = vector.broadcast %cst : f32 to vector<8x512xf32>
      %c0 = arith.constant 0 : index
      %c0_2 = arith.constant 0 : index
      %9 = vector.load %arg6[%c0, %c0_2] : memref<8x512xf32, #tpu.memory_space<vmem>>, vector<8x512xf32>
      tpu.vector_store %arg6[%c0, %c0_2], %8 {strides = array<i32>} : memref<8x512xf32, #tpu.memory_space<vmem>>, vector<8x512xf32>,
    } else {
    }
    %3 = arith.index_cast %arg0 : i32 to index
    %4 = memref.load %arg3[%3] : memref<4xi32, #tpu.memory_space<smem>>
    %5 = arith.cmpi slt, %arg1, %4 : i32
    %6 = arith.extui %5 : i1 to i32
    %c0_i32_1 = arith.constant 0 : i32
    %7 = arith.cmpi ne, %6, %c0_i32_1 : i32
    scf.if %7 {
      %8 = arith.index_cast %arg0 : i32 to index
      %9 = memref.load %arg2[%8] : memref<4xi32, #tpu.memory_space<smem>>
      %10 = arith.addi %9, %arg1 : i32
      %c0 = arith.constant 0 : index
      %c0_2 = arith.constant 0 : index
      %c0_3 = arith.constant 0 : index
      %11 = vector.load %arg4[%c0, %c0_2, %c0_3] : memref<1x1x512xi32, #tpu.memory_space<vmem>>, vector<1x1x512xi32>
      %12 = vector.shape_cast %11 : vector<1x1x512xi32> to vector<1x512xi32>
      %c128_i32 = arith.constant 128 : i32
      %13 = arith.muli %10, %c128_i32 : i32
      %14 = vector.broadcast %13 : i32 to vector<1x512xi32>
      %15 = arith.subi %12, %14 : vector<1x512xi32>
      %16 = tpu.iota {dimensions = array<i32: 0>} : vector<128x512xi32>
      %17 = vector.broadcast %15 : vector<1x512xi32> to vector<128x512xi32>
      %18 = arith.cmpi eq, %16, %17 : vector<128x512xi32>
      %19 = arith.extui %18 : vector<128x512xi1> to vector<128x512xi32>
      %20 = arith.sitofp %19 : vector<128x512xi32> to vector<128x512xf32>
      %c0_4 = arith.constant 0 : index
      %c0_5 = arith.constant 0 : index
      %21 = vector.load %arg6[%c0_4, %c0_5] : memref<8x512xf32, #tpu.memory_space<vmem>>, vector<8x512xf32>
      %c0_6 = arith.constant 0 : index
      %c0_7 = arith.constant 0 : index
      %22 = vector.load %arg5[%c0_6, %c0_7] : memref<8x128xf32, #tpu.memory_space<vmem>>, vector<8x128xf32>
      %cst = arith.constant dense<0.000000e+00> : vector<8x512xf32>
      %23 = tpu.matmul %22, %20, %cst {dimension_numbers = #tpu.dot_dimension_numbers<[1], [0], [0], [1], [0, 0, 1, 1], [], []>} : vector<8x128xf32>, vector<128x512xf32>, vector<8x512xf32> -> vector<8x512xf32>
      %24 = arith.addf %21, %23 : vector<8x512xf32>
      %c0_8 = arith.constant 0 : index
      %c0_9 = arith.constant 0 : index
      %25 = vector.load %arg6[%c0_8, %c0_9] : memref<8x512xf32, #tpu.memory_space<vmem>>, vector<8x512xf32>
      tpu.vector_store %arg6[%c0_8, %c0_9], %24 {strides = array<i32>} : memref<8x512xf32, #tpu.memory_space<vmem>>, vector<8x512xf32>,
    } else {
    }
    return
  }
  func.func @transform_0(%arg0: i32, %arg1: i32, %arg2: memref<4xi32, #tpu.memory_space<smem>>, %arg3: memref<4xi32, #tpu.memory_space<smem>>) -> (i32, i32, i32) {
    %c0_i32 = arith.constant 0 : i32
    %c0_i32_0 = arith.constant 0 : i32
    %c0_i32_1 = arith.constant 0 : i32
    return %arg0, %c0_i32, %c0_i32_0 : i32, i32, i32
  }
  func.func @transform_1(%arg0: i32, %arg1: i32, %arg2: memref<4xi32, #tpu.memory_space<smem>>, %arg3: memref<4xi32, #tpu.memory_space<smem>>) -> (i32, i32) {
    %0 = arith.index_cast %arg0 : i32 to index
    %1 = memref.load %arg2[%0] : memref<4xi32, #tpu.memory_space<smem>>
    %2 = arith.addi %1, %arg1 : i32
    %c2_i32 = arith.constant 2 : i32
    %3 = arith.minsi %2, %c2_i32 : i32
    %c0_i32 = arith.constant 0 : i32
    %c0_i32_0 = arith.constant 0 : i32
    return %c0_i32, %3 : i32, i32
  }
  func.func @transform_2(%arg0: i32, %arg1: i32, %arg2: memref<4xi32, #tpu.memory_space<smem>>, %arg3: memref<4xi32, #tpu.memory_space<smem>>) -> (i32, i32) {
    %c0_i32 = arith.constant 0 : i32
    %c0_i32_0 = arith.constant 0 : i32
    return %c0_i32, %arg0 : i32, i32
  }
}

</mosaic_0001>

<bundles_post_ra>
// kernel: tpu_custom_call.1
= control target key start
LH: loop header
LB: loop body
LE: loop exit
PB: predicated region body
PF: predicated region fallthrough
CT: control target
= control target key end

     0   :  { %s1815_s0 = inlined_call_operand.hbm [shape: s32[4], index: 0, kind: input, shape index: {}]   ;;  %s1816_s2 = inlined_call_operand.hbm [shape: s32[4,1,512], index: 2, kind: input, shape index: {}]   ;;  %s1817_s3 = inlined_call_operand.hbm [shape: f32[8,384], index: 3, kind: input, shape index: {}]   ;;  %s1818_s4 = inlined_call_operand.hbm [shape: f32[8,2048], index: 4, kind: output, shape index: {}]   ;;  %s1819_s1 = inlined_call_operand.vmem [shape: s32[4], index: 1, kind: input, shape index: {}]  }
   0x1   :  { %1829 = sst [smem:[#allocation22_spill]] %s1816_s2  ;;  %s1085_s17 = scalar_lea.hbm %s1815_s0, 16 }
   0x2   :  { %p1086_p0 = scmp.ne.s32.totalorder %s1815_s0, %s1085_s17  ;;  %p1089_p1 = scmp.lt.u32.totalorder %s1085_s17, %s1815_s0 }
   0x4   :  { %p1091_p2 = pnand %p1089_p1, %p1086_p0 }
   0x6   :  { %1094 = shalt.err (!%p1091_p2)  }
   0x7   :  { %s1297_s22 = smov [#allocation3]   ;;  %s11_s27 = sshll.u32 %s1819_s1, 4  ;;  %s12_s27 = int_to_ptr.vmem [resolvable:$true] %s11_s27 }
   0x8   :  { %10 = dma.hbm_to_smem %s1815_s0, 16, %s1297_s22, [#allocation2] }
   0x9   :  { %s1095_s28 = scalar_lea.vmem %s12_s27, 16  ;;  %p1100_p4 = scmp.lt.s32.totalorder %s12_s27, %s12_s27 }
   0xa   :  { %p1096_p3 = scmp.ne.s32.totalorder %s12_s27, %s1095_s28  ;;  %p1101_p5 = scmp.lt.s32.totalorder %s1095_s28, %s1095_s28 }
   0xc   :  { %p1102_p6 = por %p1101_p5, %p1100_p4 }
   0xe   :  { %p1103_p7 = pnand %p1102_p6, %p1096_p3 }
  0x10   :  { %1106 = shalt.err (!%p1103_p7)  }
  0x11   :  { %s1298_s29 = smov [#allocation4]  }
  0x12   :  { %14 = dma.vmem_to_smem %s12_s27, 16, %s1298_s29, [#allocation2] }
  0x13   :  { %1239 = dma.done.wait [#allocation2], 32 }
  0x14   :  { %1240 = vsyncadd [#allocation2], 4294967264 }
  0x15   :  { %16 = sfence }
  0x16   :  { %17 = vsyncpa [#allocation6], 0 }
  0x17   :  { %19 = vsyncpa [#allocation6 + $0x1], 0 }
  0x18   :  { %20 = vsyncpa [#allocation9], 0 }
  0x19   :  { %22 = vsyncpa [#allocation9 + $0x1], 0 }
  0x1a   :  { %23 = vsyncpa [#allocation7], 0 }
  0x1b   :  { %25 = vsyncpa [#allocation7 + $0x1], 0  ;;  %s1345_s0 = smov 0   ;;  %s1347_s1 = smov 0  }
  0x1c   :  { %s1349_s30 = smov 0   ;;  %s1351_s5 = smov 0  }
  0x1d   :  { %s1353_s6 = smov 0   ;;  %s1355_s7 = smov 0  }
  0x1e   :  { %s1357_s8 = smov 0   ;;  %s1359_s9 = smov 0  }
  0x1f   :  { %s1361_s10 = smov 0   ;;  %s1363_s11 = smov 0  }
  0x20   :  { %s1365_s12 = smov 0  }
  0x21 LB: > { %1830 = sst [smem:[#allocation17_spill]] %s1275_s7  ;;  %s754_s13 = sadd.s32 4294967295, %s1295_s12   ;;  %s1295_s12 = sphi %s1365_s12, %s31_s12   ;;  %s1291_s11 = sphi %s1363_s11, %s1870_s11   ;;  %s1287_s10 = sphi %s1361_s10, %s1869_s10   ;;  %s1283_s9 = sphi %s1359_s9, %s1860_s9   ;;  %s1279_s8 = sphi %s1357_s8, %s1868_s8   ;;  %s1275_s7 = sphi %s1355_s7, %s1859_s7   ;;  %s1271_s6 = sphi %s1353_s6, %s1867_s6   ;;  %s1267_s5 = sphi %s1351_s5, %s1866_s5   ;;  %s1263_s30 = sphi %s1349_s30, %s1865_s30   ;;  %s1259_s1 = sphi %s1347_s1, %s1864_s1   ;;  %s1255_s0 = sphi %s1345_s0, %s1863_s0  }
  0x22   : > { %1831 = sst [smem:[#allocation18_spill]] %s1291_s11  ;;  %s755_s14 = sadd.s32 4294967294, %s1295_s12  }
  0x23   : > { %p57_p8 = scmp.ne.s32.totalorder %s1275_s7, %s1271_s6  ;;  %p1821_p9 = scmp.eq.s32.totalorder %s1295_s12, 0 }
  0x24   : > { %p63_p10 = scmp.ne.s32.totalorder %s1271_s6, %s1267_s5  ;;  %p1407_p11 = scmp.eq.s32.totalorder %s754_s13, 0 }
  0x25   : > { %p121_p12 = scmp.eq.s32.totalorder %s754_s13, 11  ;;  %p1413_p13 = por %p1821_p9, %p57_p8 }
  0x26   : > { %p127_p0 = scmp.eq.s32.totalorder %s755_s14, 11  ;;  %p1419_p1 = por %p1407_p11, %p63_p10 }
  0x27   : > { %p1423_p2 = por %p121_p12, %p57_p8  ;;  %p1820_p4 = scmp.lt.s32.totalorder %s1295_s12, 12 }
  0x28   : > { %s1834_s17 = scalar_select %p1419_p1, 1, 0 }
  0x29   : > { %s1835_s18 = scalar_select %p1423_p2, 1, 0 }
  0x2a   : > { %p1427_p3 = por %p127_p0, %p63_p10  ;;  %s147_s20 = sand.u32 1, %s1275_s7  }
  0x2b   : > { %s758_s21 = sshll.u32 %s147_s20, 2  ;;  %s903_s22 = sshll.u32 %s1291_s11, 6 }
  0x2c   : > { %s1836_s19 = scalar_select %p1427_p3, 1, 0 }
  0x2d   : > { %s1837_s2 = sld [smem:[#allocation22_spill]]  ;;  %s151_s26 = scalar_lea.vmem [#allocation5], %s758_s21 }
  0x2e   : > { %s159_s27 = sshll.u32 %s151_s26, 4  ;;  %p1445_p5 = pnand %p1820_p4, %p1413_p13  ;;  %s1439_s27 = int_to_ptr.vmem [resolvable:$true] %s159_s27 }
  0x2f   : > { %s148_s29 = scalar_lea.sflag [#allocation6], %s147_s20 }
  0x30   : > { %p1109_p10 = pneg %p1445_p5 }
  0x33   : > { %s1437_s25 = scalar_lea.hbm %s1837_s2, %s903_s22  ;;  %s1112_s21 = scalar_lea.hbm %s1837_s2, 256 }
  0x34   : > { %s1107_s13 = scalar_lea.hbm %s1437_s25, 64  ;;  %p1113_p13 = scmp.lt.u32.totalorder %s1437_s25, %s1837_s2 }
  0x35   : > { %p1108_p8 = scmp.ne.s32.totalorder %s1437_s25, %s1107_s13  ;;  %p1114_p4 = scmp.lt.u32.totalorder %s1112_s21, %s1107_s13 }
  0x36   : > { %p1116_p6 = scmp.lt.u32.totalorder %s1107_s13, %s1437_s25 }
  0x37   : > { %p1110_p12 = pnand %p1109_p10, %p1108_p8  ;;  %p1115_p9 = por %p1114_p4, %p1113_p13 }
  0x39   : > { %p1111_p0 = pneg %p1110_p12  ;;  %p1117_p7 = por %p1116_p6, %p1115_p9 }
  0x3b   : > { %p1118_p3 = pnand %p1117_p7, %p1111_p0 }
  0x3d   : > { %1121 = shalt.err (!%p1118_p3)
}
  0x3e   : > { %s1122_s20 = scalar_lea.vmem %s1439_s27, 64  ;;  %s1299_s24 = smov [#allocation5]  }
  0x3f   : > { %p1123_p8 = scmp.ne.s32.totalorder %s1439_s27, %s1122_s20  ;;  %s1127_s26 = sshll.u32 %s1299_s24, 4  ;;  %s1128_s26 = int_to_ptr.vmem [resolvable:$false] %s1127_s26 }
  0x40   : > { %s1129_s14 = scalar_lea.vmem %s1128_s26, 128  ;;  %p1130_p1 = scmp.lt.s32.totalorder %s1439_s27, %s1128_s26 }
  0x41   : > { %p1125_p12 = pnand %p1123_p8, %p1109_p10  ;;  %p1131_p4 = scmp.lt.s32.totalorder %s1129_s14, %s1122_s20 }
  0x43   : > { %p1126_p2 = pneg %p1125_p12  ;;  %p1132_p13 = por %p1131_p4, %p1130_p1 }
  0x45   : > { %p1133_p9 = pnand %p1132_p13, %p1126_p2 }
  0x47   : > { %1136 = shalt.err (!%p1133_p9)
}
  0x48   : > { %980 = dma.hbm_to_vmem [thread:$0]  (!%p1445_p5), %s1437_s25, 64, %s1439_s27, %s148_s29  }
  0x49   : > { %p1839_p1 = scmp.lt.s32.totalorder %s1295_s12, 13  ;;  %p1840_p2 = scmp.ge.s32.totalorder %s1295_s12, 1 }
  0x4a   : > { %s40_s13 = sadd.s32 1, %s1287_s10  ;;  %s43_s16 = sadd.s32 1, %s1291_s11 }
  0x4b   : > { %p1480_p3 = pnand %p1840_p2, %p1839_p1  ;;  %p1486_p6 = scmp.ge.s32.totalorder %s40_s13, 3 }
  0x4c   : > { %s73_s22 = sld [smem:[#allocation3 + %s1291_s11]]  ;;  %p97_p5 = scmp.ne.s32.totalorder %s1259_s1, %s1255_s0 }
  0x4d   : > { %s1872_s16 = smov (!%p1486_p6, %s43_s16), %s1291_s11  ;;  %p91_p10 = scmp.ne.s32.totalorder %s1263_s30, %s1259_s1 }
  0x4e   : > { %p45_p7 = scmp.ge.s32.totalorder %s1872_s16, 4  ;;  %p1501_p0 = por %p97_p5, %p1407_p11 }
  0x4f   : > { %s50_s29 = sadd.s32 1, %s1275_s7  ;;  %p1845_p4 = scmp.eq.s32.totalorder %s1295_s12, 0 }
  0x50   : > { %s1843_s27 = scalar_select %p1501_p0, 1, 0 }
  0x51   : > { %s1874_s16 = smov (%p45_p7, %s1872_s16), 0  ;;  %p1513_p13 = por %p91_p10, %p1845_p4 }
  0x52   : > { %s74_s25 = sadd.s32 %s1287_s10, %s73_s22  ;;  %1844 = sst [smem:[#allocation19_spill]] %s1874_s16 }
  0x53   : > { %p75_p8 = scmp.lt.s32.totalorder %s74_s25, 2  ;;  %s47_s23 = ssub.s32 %s1291_s11, %s1874_s16 }
  0x54   : > { %s77_s0 = sld [smem:[#allocation3 + %s1874_s16]]  ;;  %p48_p12 = scmp.eq.s32.totalorder %s47_s23, 0 }
  0x55   : > { %s1876_s13 = smov (%p1486_p6, %s40_s13), 0  ;;  %s1878_s25 = smov (!%p75_p8, %s74_s25), 2 }
  0x56   : > { %1847 = sst [smem:[#allocation20_spill]] %s1876_s13  ;;  %s84_s14 = sadd.s32 1, %s1263_s30 }
  0x57   : > { %s1522_s20 = scalar_select %p48_p12, %s1275_s7, %s50_s29  }
  0x58   : > { %s970_s24 = scalar_select %p1513_p13, [#allocation3], [#allocation11] }
  0x59   : > { %1848 = sst [smem:[#allocation21_spill]] %s1522_s20  ;;  %p1849_p9 = scmp.lt.s32.totalorder %s1295_s12, 12 }
  0x5a   : > { %s78_s26 = sadd.s32 %s77_s0, %s1876_s13  ;;  %s166_s23 = sand.u32 1, %s1263_s30  }
  0x5b   : > { %p79_p11 = scmp.lt.s32.totalorder %s78_s26, 2  ;;  %p1532_p1 = pnand %p1849_p9, %p1513_p13 }
  0x5c   : > { %s971_s22 = scalar_select %p1513_p13, %s1291_s11, 0 }
  0x5d   : > { %s1880_s26 = smov (!%p79_p11, %s78_s26), 2  ;;  %p1851_p2 = pmov %p1849_p9 }
  0x5e   : > { %s81_s29 = ssub.s32 %s1878_s25, %s1880_s26  ;;  %s761_s16 = sshll.u32 %s166_s23, 3 }
  0x5f   : > { %s1882_s24 = smov (!%p1851_p2, %s970_s24), [#allocation12]  ;;  %p82_p6 = scmp.eq.s32.totalorder %s81_s29, 0 }
  0x60   : > { %p1852_p5 = pmov %p1851_p2  ;;  %s170_s20 = scalar_lea.vmem [#allocation8], %s761_s16 }
  0x61   : > { %s1545_s0 = scalar_select %p82_p6, %s1263_s30, %s84_s14  }
  0x62   : > { %s1884_s22 = smov (!%p1852_p5, %s971_s22), 0  ;;  %s181_s7 = sshll.u32 %s170_s20, 4  ;;  %s1548_s7 = int_to_ptr.vmem [resolvable:$true] %s181_s7 }
  0x63   : > { %s171_s2 = sld [smem:[%s1882_s24 + %s1884_s22]]  ;;  %s167_s14 = scalar_lea.sflag [#allocation9], %s166_s23 }
  0x64   : > { %p1139_p8 = pneg %p1532_p1  ;;  %s1142_s16 = scalar_lea.hbm %s1817_s3, 384 }
  0x69   : > { %s172_s13 = sadd.s32 %s1287_s10, %s171_s2 }
  0x6a   : > { %p173_p7 = scmp.lt.s32.totalorder %s172_s13, 2 }
  0x6c   : > { %s1886_s13 = smov (!%p173_p7, %s172_s13), 2 }
  0x6d   : > { %s762_s15 = sshll.u32 %s1886_s13, 7 }
  0x6e   : > { %s1553_s26 = scalar_lea.hbm %s1817_s3, %s762_s15 }
  0x6f   : > { %s1137_s24 = scalar_lea.hbm %s1553_s26, 128  ;;  %p1143_p13 = scmp.lt.u32.totalorder %s1553_s26, %s1817_s3 }
  0x70   : > { %p1138_p10 = scmp.ne.s32.totalorder %s1553_s26, %s1137_s24  ;;  %p1144_p11 = scmp.lt.u32.totalorder %s1142_s16, %s1137_s24 }
  0x71   : > { %p1146_p2 = scmp.lt.u32.totalorder %s1137_s24, %s1553_s26 }
  0x72   : > { %p1140_p12 = pnand %p1139_p8, %p1138_p10  ;;  %p1145_p9 = por %p1144_p11, %p1143_p13 }
  0x74   : > { %p1141_p4 = pneg %p1140_p12  ;;  %p1147_p6 = por %p1146_p2, %p1145_p9 }
  0x76   : > { %p1148_p5 = pnand %p1147_p6, %p1141_p4 }
  0x78   : > { %1151 = shalt.err (!%p1148_p5)
}
  0x79   : > { %s1152_s22 = scalar_lea.vmem %s1548_s7, 128  ;;  %s1300_s29 = smov [#allocation8]  }
  0x7a   : > { %p1153_p7 = scmp.ne.s32.totalorder %s1548_s7, %s1152_s22  ;;  %s1157_s23 = sshll.u32 %s1300_s29, 4  ;;  %s1158_s23 = int_to_ptr.vmem [resolvable:$false] %s1157_s23 }
  0x7b   : > { %s1159_s15 = scalar_lea.vmem %s1158_s23, 256  ;;  %p1160_p0 = scmp.lt.s32.totalorder %s1548_s7, %s1158_s23 }
  0x7c   : > { %p1155_p10 = pnand %p1153_p7, %p1139_p8  ;;  %p1161_p13 = scmp.lt.s32.totalorder %s1159_s15, %s1152_s22 }
  0x7e   : > { %p1156_p12 = pneg %p1155_p10  ;;  %p1162_p11 = por %p1161_p13, %p1160_p0 }
  0x80   : > { %p1163_p9 = pnand %p1162_p11, %p1156_p12 }
  0x82   : > { %1166 = shalt.err (!%p1163_p9)
}
  0x83   : > { %985 = dma.hbm_to_vmem [thread:$0]  (!%p1532_p1), %s1553_s26, 128, %s1548_s7, %s167_s14  }
  0x84   : > { %190 = sbr.rel (%p1480_p3) target bundleno = 450 (0x1c2), region = 28  ;;  %s1583_s25 = sand.u32 (!%p1480_p3), 1, %s1271_s6  }
  0x85   : > { %s764_s24 = sshll.u32 (!%p1480_p3), %s1583_s25, 2  ;;  %s193_s2 = scalar_lea.sflag (!%p1480_p3), [#allocation6], %s1583_s25 }
  0x86   : > { %s1587_s13 = scalar_lea.vmem (!%p1480_p3), [#allocation5], %s764_s24  ;;  %p1853_p0 = scmp.ne.s32.totalorder (!%p1480_p3), %s1834_s17, 0 }
  0x8b   : > { %1242 = dma.done.wait (%p1853_p0), %s193_s2, 64  }
  0x8c   : > { %1244 = vsyncadd (%p1853_p0), %s193_s2, 4294967232  ;;  %s201_s7 = sand.u32 1, %s1259_s1   ;;  %p1854_p3 = scmp.ne.s32.totalorder %s1843_s27, 0 }
  0x8d   : > { %s1594_s28 = sshll.u32 %s201_s7, 3  ;;  %s202_s21 = scalar_lea.sflag [#allocation9], %s201_s7 }
  0x8e   : > { %s205_s26 = scalar_lea.vmem [#allocation8], %s1594_s28 }
  0x8f   : > { %1246 = dma.done.wait (%p1854_p3), %s202_s21, 128  }
  0x90   : > { %1248 = vsyncadd (%p1854_p3), %s202_s21, 4294967168  ;;  %s766_s14 = sshll.u32 %s1583_s25, 5  ;;  %p767_p1 = scmp.ne.s32.totalorder %s1279_s8, 0 }
  0x91   : > { %s1602_s16 = scalar_lea.vmem [#allocation10], %s766_s14  ;;  %v1301_v0 = vmov (!%p767_p1), 0.0  }
  0x92   : > { %239 = sbr.rel (%p767_p1) target bundleno = 153 (0x99), region = 40  ;;  %240 = vst [vmem:[%s1602_s16] sm:$0xff] (!%p767_p1), %v1301_v0  ;;  %241 = vst [vmem:[%s1602_s16 + $0x8] sm:$0xff] (!%p767_p1), %v1301_v0 }
  0x93   : > { %242 = vst [vmem:[%s1602_s16 + $0x10] sm:$0xff] (!%p767_p1), %v1301_v0  ;;  %243 = vst [vmem:[%s1602_s16 + $0x18] sm:$0xff] (!%p767_p1), %v1301_v0 }
  0x99 PF: > { %s244_s17 = sld [smem:[#allocation4 + %s1283_s9]] }
  0x9f   : > { %p768_p8 = scmp.ge.s32.totalorder %s1279_s8, %s244_s17 }
  0xa0   : > { %s249_s27 = sld [smem:[#allocation3 + %s1283_s9]] (!%p768_p8)  ;;  %v255_v1 = vlaneseq (!%p768_p8)  ;;  %v1302_v2 = vmov (!%p768_p8), 0.0   ;;  %v251_v4 = vld [vmem:[%s1587_s13] sm:$0xf] (!%p768_p8)  ;;  %v1303_v18 = vmov (!%p768_p8), 1.0|1.0  }
  0xa1   : > { %248 = sbr.rel (%p768_p8) target bundleno = 425 (0x1a9), region = 44  ;;  %549 = vmatprep.mubr.f32.mxu0 (!%p768_p8), %v1302_v2  ;;  %620 = vmatprep.mubr.f32.mxu1 (!%p768_p8), %v1302_v2  ;;  %v484_v31 = vld [vmem:[%s205_s26] sm:$0xff] (!%p768_p8)  ;;  %v480_v32 = vld [vmem:[%s1602_s16] sm:$0xff] (!%p768_p8)  ;;  %v481_v34 = vld [vmem:[%s1602_s16 + $0x8] sm:$0xff] (!%p768_p8) }
  0xa2   : > { %v1612_v3 = vshrl.u32 (!%p768_p8), %v255_v1, 7  ;;  %v482_v33 = vld [vmem:[%s1602_s16 + $0x10] sm:$0xff] (!%p768_p8)  ;;  %v483_v36 = vld [vmem:[%s1602_s16 + $0x18] sm:$0xff] (!%p768_p8) }
  0xa4   : > { %v278_v5 = vsub.s32 (!%p768_p8), 1, %v1612_v3  ;;  %v286_v6 = vsub.s32 (!%p768_p8), 3, %v1612_v3  ;;  %v274_v7 = vsub.s32 (!%p768_p8), 0, %v1612_v3  ;;  %v282_v8 = vsub.s32 (!%p768_p8), 2, %v1612_v3 }
  0xa5   : > { %v257_v11 = vadd.s32 (!%p768_p8), 8, %v1612_v3  ;;  %v258_v12 = vadd.s32 (!%p768_p8), 16, %v1612_v3  ;;  %v259_v13 = vadd.s32 (!%p768_p8), 24, %v1612_v3  ;;  %v260_v19 = vadd.s32 (!%p768_p8), 32, %v1612_v3 }
  0xa6   : > { %s250_s11 = sadd.s32 (!%p768_p8), %s1279_s8, %s249_s27  ;;  %v261_v20 = vadd.s32 (!%p768_p8), 40, %v1612_v3  ;;  %v262_v21 = vadd.s32 (!%p768_p8), 48, %v1612_v3  ;;  %v263_v22 = vadd.s32 (!%p768_p8), 56, %v1612_v3  ;;  %v264_v23 = vadd.s32 (!%p768_p8), 64, %v1612_v3 }
  0xa7   : > { %s769_s20 = sshll.u32 (!%p768_p8), %s250_s11, 7  ;;  %v265_v24 = vadd.s32 (!%p768_p8), 72, %v1612_v3  ;;  %v266_v25 = vadd.s32 (!%p768_p8), 80, %v1612_v3  ;;  %v267_v26 = vadd.s32 (!%p768_p8), 88, %v1612_v3  ;;  %v268_v27 = vadd.s32 (!%p768_p8), 96, %v1612_v3 }
  0xa8   : > { %v253_v9 = vstv %s769_s20  ;;  %v269_v28 = vadd.s32 104, %v1612_v3  ;;  %v270_v29 = vadd.s32 112, %v1612_v3  ;;  %v271_v30 = vadd.s32 120, %v1612_v3 }
  0xa9   : > { %v254_v10 = vsub.s32 %v251_v4, %v253_v9 }
  0xab   : > { %v1623_v14 = vrot.slane %v254_v10, %v278_v5  ;;  %v1625_v15 = vrot.slane %v254_v10, %v286_v6  ;;  %v1627_v16 = vrot.slane %v254_v10, %v274_v7  ;;  %v1629_v17 = vrot.slane %v254_v10, %v282_v8 }
  0xad   : > { %vm289_vm0 = vcmp.eq.s32.totalorder %v1612_v3, %v1623_v14  ;;  %vm293_vm1 = vcmp.eq.s32.totalorder %v257_v11, %v1623_v14  ;;  %vm291_vm2 = vcmp.eq.s32.totalorder %v1612_v3, %v1625_v15  ;;  %vm295_vm3 = vcmp.eq.s32.totalorder %v257_v11, %v1625_v15 }
  0xae   : > { %vm905_vm4 = vmpackc.low %vm293_vm1, %vm289_vm0  ;;  %vm288_vm5 = vcmp.eq.s32.totalorder %v1612_v3, %v1627_v16  ;;  %vm292_vm6 = vcmp.eq.s32.totalorder %v257_v11, %v1627_v16  ;;  %vm290_vm7 = vcmp.eq.s32.totalorder %v1612_v3, %v1629_v17  ;;  %vm294_vm8 = vcmp.eq.s32.totalorder %v257_v11, %v1629_v17 }
  0xaf   : > { %906 = vmatprep.subr.msk.bf16.mxu0 %vm905_vm4, %v1303_v18  ;;  %vm937_vm9 = vmpackc.low %vm295_vm3, %vm291_vm2  ;;  %vm297_vm10 = vcmp.eq.s32.totalorder %v258_v12, %v1623_v14  ;;  %vm301_vm11 = vcmp.eq.s32.totalorder %v259_v13, %v1623_v14  ;;  %vm299_vm13 = vcmp.eq.s32.totalorder %v258_v12, %v1625_v15  ;;  %vm303_vm14 = vcmp.eq.s32.totalorder %v259_v13, %v1625_v15 }
  0xb0   : > { %938 = vmatprep.subr.msk.bf16.mxu1 %vm937_vm9, %v1303_v18  ;;  %vm907_vm12 = vmpackc.low %vm292_vm6, %vm288_vm5  ;;  %vm296_vm0 = vcmp.eq.s32.totalorder %v258_v12, %v1627_v16  ;;  %vm300_vm1 = vcmp.eq.s32.totalorder %v259_v13, %v1627_v16  ;;  %vm298_vm3 = vcmp.eq.s32.totalorder %v258_v12, %v1629_v17  ;;  %vm302_vm4 = vcmp.eq.s32.totalorder %v259_v13, %v1629_v17 }
  0xb1   : > { %908 = vmatpush1.bf16.msk.msra.mxu0 %vm907_vm12, %v1303_v18  ;;  %vm939_vm15 = vmpackc.low %vm294_vm8, %vm290_vm7  ;;  %vm305_vm6 = vcmp.eq.s32.totalorder %v260_v19, %v1623_v14  ;;  %vm309_vm9 = vcmp.eq.s32.totalorder %v261_v20, %v1623_v14  ;;  %vm307_vm8 = vcmp.eq.s32.totalorder %v260_v19, %v1625_v15  ;;  %vm304_vm12 = vcmp.eq.s32.totalorder %v260_v19, %v1627_v16 }
  0xb2   : > { %940 = vmatpush1.bf16.msk.msra.mxu1 %vm939_vm15, %v1303_v18  ;;  %vm909_vm2 = vmpackc.low %vm301_vm11, %vm297_vm10  ;;  %vm311_vm10 = vcmp.eq.s32.totalorder %v261_v20, %v1625_v15  ;;  %vm306_vm15 = vcmp.eq.s32.totalorder %v260_v19, %v1629_v17 }
  0xb3   : > { %910 = vmatprep.subr.msk.bf16.mxu0 %vm909_vm2, %v1303_v18  ;;  %vm941_vm5 = vmpackc.low %vm303_vm14, %vm299_vm13  ;;  %vm308_vm13 = vcmp.eq.s32.totalorder %v261_v20, %v1627_v16  ;;  %vm310_vm2 = vcmp.eq.s32.totalorder %v261_v20, %v1629_v17 }
  0xb4   : > { %942 = vmatprep.subr.msk.bf16.mxu1 %vm941_vm5, %v1303_v18  ;;  %vm911_vm7 = vmpackc.low %vm300_vm1, %vm296_vm0  ;;  %vm313_vm1 = vcmp.eq.s32.totalorder %v262_v21, %v1623_v14  ;;  %vm317_vm5 = vcmp.eq.s32.totalorder %v263_v22, %v1623_v14 }
  0xb5   : > { %912 = vmatpush1.bf16.msk.msra.mxu0 %vm911_vm7, %v1303_v18  ;;  %vm943_vm11 = vmpackc.low %vm302_vm4, %vm298_vm3  ;;  %vm315_vm4 = vcmp.eq.s32.totalorder %v262_v21, %v1625_v15  ;;  %vm312_vm7 = vcmp.eq.s32.totalorder %v262_v21, %v1627_v16 }
  0xb6   : > { %944 = vmatpush1.bf16.msk.msra.mxu1 %vm943_vm11, %v1303_v18  ;;  %vm913_vm14 = vmpackc.low %vm309_vm9, %vm305_vm6  ;;  %vm319_vm6 = vcmp.eq.s32.totalorder %v263_v22, %v1625_v15  ;;  %vm314_vm11 = vcmp.eq.s32.totalorder %v262_v21, %v1629_v17 }
  0xb7   : > { %914 = vmatprep.subr.msk.bf16.mxu0 %vm913_vm14, %v1303_v18  ;;  %vm945_vm0 = vmpackc.low %vm311_vm10, %vm307_vm8  ;;  %vm316_vm8 = vcmp.eq.s32.totalorder %v263_v22, %v1627_v16  ;;  %vm318_vm14 = vcmp.eq.s32.totalorder %v263_v22, %v1629_v17 }
  0xb8   : > { %946 = vmatprep.subr.msk.bf16.mxu1 %vm945_vm0, %v1303_v18  ;;  %vm915_vm3 = vmpackc.low %vm308_vm13, %vm304_vm12  ;;  %vm321_vm13 = vcmp.eq.s32.totalorder %v264_v23, %v1623_v14  ;;  %vm325_vm0 = vcmp.eq.s32.totalorder %v265_v24, %v1623_v14 }
  0xb9   : > { %916 = vmatpush1.bf16.msk.msra.mxu0 %vm915_vm3, %v1303_v18  ;;  %vm947_vm9 = vmpackc.low %vm310_vm2, %vm306_vm15  ;;  %vm323_vm2 = vcmp.eq.s32.totalorder %v264_v23, %v1625_v15  ;;  %vm320_vm3 = vcmp.eq.s32.totalorder %v264_v23, %v1627_v16 }
  0xba   : > { %948 = vmatpush1.bf16.msk.msra.mxu1 %vm947_vm9, %v1303_v18  ;;  %vm917_vm10 = vmpackc.low %vm317_vm5, %vm313_vm1  ;;  %vm327_vm1 = vcmp.eq.s32.totalorder %v265_v24, %v1625_v15  ;;  %vm322_vm9 = vcmp.eq.s32.totalorder %v264_v23, %v1629_v17 }
  0xbb   : > { %918 = vmatprep.subr.msk.bf16.mxu0 %vm917_vm10, %v1303_v18  ;;  %vm949_vm12 = vmpackc.low %vm319_vm6, %vm315_vm4  ;;  %vm324_vm4 = vcmp.eq.s32.totalorder %v265_v24, %v1627_v16  ;;  %vm326_vm10 = vcmp.eq.s32.totalorder %v265_v24, %v1629_v17 }
  0xbc   : > { %950 = vmatprep.subr.msk.bf16.mxu1 %vm949_vm12, %v1303_v18  ;;  %vm919_vm15 = vmpackc.low %vm316_vm8, %vm312_vm7  ;;  %vm329_vm8 = vcmp.eq.s32.totalorder %v266_v25, %v1623_v14  ;;  %vm333_vm12 = vcmp.eq.s32.totalorder %v267_v26, %v1623_v14 }
  0xbd   : > { %920 = vmatpush1.bf16.msk.msra.mxu0 %vm919_vm15, %v1303_v18  ;;  %vm951_vm5 = vmpackc.low %vm318_vm14, %vm314_vm11  ;;  %vm331_vm14 = vcmp.eq.s32.totalorder %v266_v25, %v1625_v15  ;;  %vm328_vm15 = vcmp.eq.s32.totalorder %v266_v25, %v1627_v16 }
  0xbe   : > { %952 = vmatpush1.bf16.msk.msra.mxu1 %vm951_vm5, %v1303_v18  ;;  %vm921_vm6 = vmpackc.low %vm325_vm0, %vm321_vm13  ;;  %vm335_vm13 = vcmp.eq.s32.totalorder %v267_v26, %v1625_v15  ;;  %vm330_vm5 = vcmp.eq.s32.totalorder %v266_v25, %v1629_v17 }
  0xbf   : > { %922 = vmatprep.subr.msk.bf16.mxu0 %vm921_vm6, %v1303_v18  ;;  %vm953_vm7 = vmpackc.low %vm327_vm1, %vm323_vm2  ;;  %vm332_vm2 = vcmp.eq.s32.totalorder %v267_v26, %v1627_v16  ;;  %vm334_vm6 = vcmp.eq.s32.totalorder %v267_v26, %v1629_v17 }
  0xc0   : > { %954 = vmatprep.subr.msk.bf16.mxu1 %vm953_vm7, %v1303_v18  ;;  %vm923_vm11 = vmpackc.low %vm324_vm4, %vm320_vm3  ;;  %vm337_vm4 = vcmp.eq.s32.totalorder %v268_v27, %v1623_v14  ;;  %vm341_vm7 = vcmp.eq.s32.totalorder %v269_v28, %v1623_v14 }
  0xc1   : > { %924 = vmatpush1.bf16.msk.msra.mxu0 %vm923_vm11, %v1303_v18  ;;  %vm955_vm0 = vmpackc.low %vm326_vm10, %vm322_vm9  ;;  %vm339_vm10 = vcmp.eq.s32.totalorder %v268_v27, %v1625_v15  ;;  %vm336_vm11 = vcmp.eq.s32.totalorder %v268_v27, %v1627_v16 }
  0xc2   : > { %956 = vmatpush1.bf16.msk.msra.mxu1 %vm955_vm0, %v1303_v18  ;;  %vm925_vm1 = vmpackc.low %vm333_vm12, %vm329_vm8  ;;  %vm343_vm8 = vcmp.eq.s32.totalorder %v269_v28, %v1625_v15  ;;  %vm338_vm0 = vcmp.eq.s32.totalorder %v268_v27, %v1629_v17 }
  0xc3   : > { %926 = vmatprep.subr.msk.bf16.mxu0 %vm925_vm1, %v1303_v18  ;;  %vm957_vm3 = vmpackc.low %vm335_vm13, %vm331_vm14  ;;  %vm340_vm14 = vcmp.eq.s32.totalorder %v269_v28, %v1627_v16  ;;  %vm342_vm1 = vcmp.eq.s32.totalorder %v269_v28, %v1629_v17 }
  0xc4   : > { %958 = vmatprep.subr.msk.bf16.mxu1 %vm957_vm3, %v1303_v18  ;;  %vm927_vm9 = vmpackc.low %vm332_vm2, %vm328_vm15  ;;  %vm345_vm2 = vcmp.eq.s32.totalorder %v270_v29, %v1623_v14  ;;  %vm349_vm3 = vcmp.eq.s32.totalorder %v271_v30, %v1623_v14 }
  0xc5   : > { %928 = vmatpush1.bf16.msk.msra.mxu0 %vm927_vm9, %v1303_v18  ;;  %vm959_vm12 = vmpackc.low %vm334_vm6, %vm330_vm5  ;;  %vm347_vm6 = vcmp.eq.s32.totalorder %v270_v29, %v1625_v15  ;;  %vm351_vm9 = vcmp.eq.s32.totalorder %v271_v30, %v1625_v15 }
  0xc6   : > { %960 = vmatpush1.bf16.msk.msra.mxu1 %vm959_vm12, %v1303_v18  ;;  %vm929_vm13 = vmpackc.low %vm341_vm7, %vm337_vm4  ;;  %vm344_vm7 = vcmp.eq.s32.totalorder %v270_v29, %v1627_v16  ;;  %vm346_vm12 = vcmp.eq.s32.totalorder %v270_v29, %v1629_v17 }
  0xc7   : > { %930 = vmatprep.subr.msk.bf16.mxu0 %vm929_vm13, %v1303_v18  ;;  %vm961_vm15 = vmpackc.low %vm343_vm8, %vm339_vm10  ;;  %vm348_vm10 = vcmp.eq.s32.totalorder %v271_v30, %v1627_v16 }
  0xc8   : > { %962 = vmatprep.subr.msk.bf16.mxu1 %vm961_vm15, %v1303_v18  ;;  %vm931_vm5 = vmpackc.low %vm340_vm14, %vm336_vm11  ;;  %vm350_vm11 = vcmp.eq.s32.totalorder %v271_v30, %v1629_v17 }
  0xc9   : > { %932 = vmatpush1.bf16.msk.msra.mxu0 %vm931_vm5, %v1303_v18  ;;  %vm963_vm4 = vmpackc.low %vm342_vm1, %vm338_vm0 }
  0xca   : > { %964 = vmatpush1.bf16.msk.msra.mxu1 %vm963_vm4, %v1303_v18  ;;  %vm933_vm8 = vmpackc.low %vm349_vm3, %vm345_vm2 }
  0xcb   : > { %934 = vmatprep.subr.msk.bf16.mxu0 %vm933_vm8, %v1303_v18  ;;  %vm965_vm14 = vmpackc.low %vm351_vm9, %vm347_vm6 }
  0xcc   : > { %966 = vmatprep.subr.msk.bf16.mxu1 %vm965_vm14, %v1303_v18  ;;  %vm935_vm13 = vmpackc.low %vm348_vm10, %vm344_vm7 }
  0xcd   : > { %936 = vmatpush1.bf16.msk.msra.mxu0 %vm935_vm13, %v1303_v18  ;;  %vm967_vm0 = vmpackc.low %vm350_vm11, %vm346_vm12 }
  0xce   : > { %968 = vmatpush1.bf16.msk.msra.mxu1 %vm967_vm0, %v1303_v18 }
  0xd0   : > { %550 = vmatmul.mubr.f32.vlgmr.msra.gmra.mrb[0].mxu0 %v484_v31 }
  0xd1   : > { %621 = vmatmul.mubr.f32.vlgmr.msra.gmra.mrb[0].mxu1 %v484_v31 }
 0x1a3   : > { %v551_v35 = vpop.f32.mrb[0].mxu0 }
 0x1a4   : > { %v627_v37 = vadd.f32 %v551_v35, %v480_v32  ;;  %v622_v38 = vpop.f32.mrb[0].mxu1  ;;  %v553_v39 = vpop.f32.mrb[1].mxu0 }
 0x1a5   : > { %v629_v40 = vadd.f32 %v622_v38, %v482_v33  ;;  %v628_v41 = vadd.f32 %v553_v39, %v481_v34  ;;  %v624_v42 = vpop.f32.mrb[1].mxu1 }
 0x1a6   : > { %631 = vst [vmem:[%s1602_s16] sm:$0xff] %v627_v37  ;;  %v630_v43 = vadd.f32 %v624_v42, %v483_v36 }
 0x1a7   : > { %633 = vst [vmem:[%s1602_s16 + $0x10] sm:$0xff] %v629_v40  ;;  %632 = vst [vmem:[%s1602_s16 + $0x8] sm:$0xff] %v628_v41 }
 0x1a8   : > { %634 = vst [vmem:[%s1602_s16 + $0x18] sm:$0xff] %v630_v43 }
 0x1a9 PF: > { %s904_s8 = sshll.u32 %s1283_s9, 9  ;;  %s650_s15 = sshll.u32 %s1602_s16, 4  ;;  %s651_s15 = int_to_ptr.vmem [resolvable:$true] %s650_s15 }
 0x1aa   : > { %s1757_s23 = scalar_lea.hbm %s1818_s4, %s904_s8  ;;  %s636_s24 = scalar_lea.sflag [#allocation7], %s1583_s25 }
 0x1ab   : > { %s1167_s2 = scalar_lea.vmem %s651_s15, 512  ;;  %p1855_p2 = scmp.ne.s32.totalorder %s1835_s18, 0 }
 0x1ac   : > { %p1168_p4 = scmp.ne.s32.totalorder %s651_s15, %s1167_s2  ;;  %s1304_s13 = smov [#allocation10]  }
 0x1ad   : > { %s1171_s7 = sshll.u32 %s1304_s13, 4  ;;  %s1172_s7 = int_to_ptr.vmem [resolvable:$false] %s1171_s7 }
 0x1ae   : > { %p1169_p6 = pnand %p1168_p4, %p1855_p2  ;;  %s1173_s28 = scalar_lea.vmem %s1172_s7, 1024 }
 0x1af   : > { %p1174_p7 = scmp.lt.s32.totalorder %s651_s15, %s1172_s7  ;;  %p1175_p10 = scmp.lt.s32.totalorder %s1173_s28, %s1167_s2 }
 0x1b0   : > { %p1170_p5 = pneg %p1169_p6 }
 0x1b1   : > { %p1176_p12 = por %p1175_p10, %p1174_p7 }
 0x1b3   : > { %p1177_p13 = pnand %p1176_p12, %p1170_p5 }
 0x1b5   : > { %1180 = shalt.err (!%p1177_p13)
}
 0x1b6   : > { %s1181_s9 = scalar_lea.hbm %s1757_s23, 512  ;;  %s1185_s26 = scalar_lea.hbm %s1818_s4, 2048 }
 0x1b7   : > { %p1182_p11 = scmp.ne.s32.totalorder %s1757_s23, %s1181_s9  ;;  %p1186_p3 = scmp.lt.u32.totalorder %s1757_s23, %s1818_s4 }
 0x1b8   : > { %p1187_p1 = scmp.lt.u32.totalorder %s1185_s26, %s1181_s9  ;;  %p1189_p4 = scmp.lt.u32.totalorder %s1181_s9, %s1757_s23 }
 0x1b9   : > { %p1183_p9 = pnand %p1182_p11, %p1855_p2 }
 0x1ba   : > { %p1188_p8 = por %p1187_p1, %p1186_p3 }
 0x1bb   : > { %p1184_p0 = pneg %p1183_p9 }
 0x1bc   : > { %p1190_p6 = por %p1189_p4, %p1188_p8 }
 0x1be   : > { %p1191_p5 = pnand %p1190_p6, %p1184_p0 }
 0x1c0   : > { %1194 = shalt.err (!%p1191_p5)
}
 0x1c1   : > { %975 = dma.vmem_to_hbm [thread:$0]  (%p1855_p2), %s651_s15, 512, %s1757_s23, %s636_s24  }
 0x1c2 PF: > { %p991_p7 = scmp.ge.s32.totalorder %s1295_s12, 2  ;;  %s662_s17 = sand.u32 1, %s1267_s5  }
 0x1c3   : > { %p1856_p10 = scmp.ne.s32.totalorder %s1836_s19, 0  ;;  %s663_s27 = scalar_lea.sflag [#allocation7], %s662_s17 }
 0x1c5   : > { %p987_p12 = pnand %p991_p7, %p1856_p10 }
 0x1c7   : > { %1250 = dma.done.wait (!%p987_p12), %s663_s27, 512  }
 0x1c8   : > { %1252 = vsyncadd (!%p987_p12), %s663_s27, 4294966784  ;;  %s31_s12 = sadd.s32 1, %s1295_s12   ;;  %s1857_s11 = smov %s1545_s0 }
 0x1c9   : > { %p28_p13 = scmp.ge.s32.totalorder %s31_s12, 14   ;;  %s1858_s18 = sld [smem:[#allocation17_spill]] }
 0x1ca   : > { %s1859_s7 = sld [smem:[#allocation21_spill]]  ;;  %s1860_s9 = sld [smem:[#allocation18_spill]] }
 0x1cb   : > { %s1861_s20 = sld [smem:[#allocation20_spill]]  ;;  %s1862_s22 = sld [smem:[#allocation19_spill]] }
 0x1cc   : > { %s1863_s0 = smov %s1259_s1  ;;  %s1864_s1 = smov %s1263_s30 }
 0x1cd   : > { %s1865_s30 = smov %s1857_s11  ;;  %s1866_s5 = smov %s1271_s6 }
 0x1ce   : > { %s1868_s8 = smov %s1287_s10  ;;  %30 = sbr.rel (!%p28_p13) target bundleno = 33 (0x21), region = 94 }
 0x1cf   : > { %s1867_s6 = smov %s1858_s18 }
 0x1d1   : > { %s1869_s10 = smov %s1861_s20  ;;  %s1870_s11 = smov %s1862_s22 }
 0x1d5   :  { %668 = vsyncpa [#allocation6], 1 }
 0x1d6   :  { %670 = vsyncpa [#allocation6 + $0x1], 1 }
 0x1d7   :  { %671 = vsyncpa [#allocation9], 1 }
 0x1d8   :  { %673 = vsyncpa [#allocation9 + $0x1], 1 }
 0x1d9   :  { %674 = vsyncpa [#allocation7], 1 }
 0x1da   :  { %676 = vsyncpa [#allocation7 + $0x1], 1 }

</bundles_post_ra>
